<compile_context>
chip_gen: v7x
topology: tpu7x:2x2x1
jax: 0.10.0
libtpu: 0.0.40
codegen_flags: <defaults>
</compile_context>

<pallas_src>
import jax
import jax.numpy as jnp
from jax.experimental import pallas as pl
from jax.experimental.pallas import tpu as pltpu


def conv_mask_kernel(x_ref, w_ref, b_ref, m_ref, o_ref):
    # x_ref: (C_in, HW_t)   w_ref: (C_out_total, C_in)   b_ref: (C_out_total, 1)
    # m_ref: (C_out_total, HW_t)   o_ref: (C_out_total, HW_t)
    acc = jnp.dot(w_ref[...], x_ref[...], preferred_element_type=jnp.float32)
    o_ref[...] = (acc + b_ref[...] + m_ref[...]).astype(o_ref.dtype)


def conv_model_mask_forward(x_nchw, weight, bias, mask, *, out_channel,
                            out_height, out_width, out_choices, hw_tile=2048):
    """Forward of _ConvModelMask with a 1x1-conv `self.conv`.

    x_nchw : (N, C_in, H, W)
    weight : (out_choices*out_channel, C_in)   (Conv2d 1x1 weight, squeezed)
    bias   : (out_choices*out_channel,)        (zeros if the conv has no bias)
    mask   : (1, out_channel, out_height, out_width, out_choices) or (1, 1, 1, 1, out_choices)
    returns: (N, out_channel, out_height, out_width, out_choices)
    """
    N, c_in, H, W = x_nchw.shape
    c_out_total = out_choices * out_channel
    assert weight.shape == (c_out_total, c_in)
    # TODO(synk): resize branch (F.adaptive_avg_pool2d / F.interpolate) for convs whose
    # output spatial size differs from (out_height, out_width) is not implemented; a
    # 1x1 conv keeps the input spatial size.
    assert H == out_height and W == out_width
    hw = H * W

    x = x_nchw.reshape(N, c_in, hw)

    # Host-side layout plumbing (done once, outside the kernel).
    b_col = bias.reshape(c_out_total, 1)
    mask_full = jnp.broadcast_to(
        mask, (1, out_channel, out_height, out_width, out_choices))
    # -> choice-major channel order (matches conv output channels), lane-dense (C, HW).
    mask_lane = jnp.transpose(mask_full[0], (3, 0, 1, 2)).reshape(c_out_total, hw)

    # HW tiling: keep each step's VMEM footprint small (v7x has 64 MiB/TC).
    tile = min(hw, hw_tile)
    if hw % tile != 0:
        tile = hw                      # small/odd shapes: take the whole spatial row
    num_hw = hw // tile

    itemsize = x.dtype.itemsize
    cost = pl.CostEstimate(
        flops=2 * N * c_out_total * c_in * hw + 2 * N * c_out_total * hw,
        transcendentals=0,
        bytes_accessed=(N * c_in * hw + N * c_out_total * hw) * itemsize
        + (c_out_total * c_in + c_out_total + c_out_total * hw) * 4,
    )

    out = pl.pallas_call(
        conv_mask_kernel,
        out_shape=jax.ShapeDtypeStruct((N, c_out_total, hw), x.dtype),
        grid_spec=pltpu.PrefetchScalarGridSpec(
            num_scalar_prefetch=0,
            grid=(N, num_hw),
            in_specs=[
                pl.BlockSpec((pl.Squeezed(), c_in, tile), lambda n, t: (n, 0, t)),  # x
                pl.BlockSpec((c_out_total, c_in), lambda n, t: (0, 0)),             # conv W
                pl.BlockSpec((c_out_total, 1), lambda n, t: (0, 0)),                # conv b
                pl.BlockSpec((c_out_total, tile), lambda n, t: (0, t)),             # mask
            ],
            out_specs=pl.BlockSpec((pl.Squeezed(), c_out_total, tile),
                                   lambda n, t: (n, 0, t)),
        ),
        compiler_params=pltpu.CompilerParams(
            # Both grid axes are independent -> both parallel (v7x: 2 TCs share work).
            dimension_semantics=("parallel", "parallel"),
            # Above the 16/32 MiB default scoped limits, below the 64 MiB v7x VMEM.
            vmem_limit_bytes=48 << 20,
        ),
        cost_estimate=cost,
    )(x, weight, b_col, mask_lane)

    # Back to the module's output layout: (N, C_out, H, W, choices).
    out = out.reshape(N, out_choices, out_channel, out_height, out_width)
    return jnp.transpose(out, (0, 2, 3, 4, 1))


def reference(x_nchw, weight, bias, mask, *, out_channel, out_choices):
    N, _, H, W = x_nchw.shape
    out = jnp.einsum('oc,nchw->nohw', weight, x_nchw) + bias[None, :, None, None]
    out = out.reshape(N, out_choices, out_channel, H, W)
    out = jnp.transpose(out, (0, 2, 3, 4, 1))
    return out + mask


if __name__ == "__main__":
    # Small shapes consistent with the module.
    N, in_channel, H, W = 2, 4, 16, 16
    out_channel, out_height, out_width, out_choices = 4, 16, 16, 2
    c_out_total = out_channel * out_choices

    key = jax.random.PRNGKey(0)
    kx, kw, kb, km = jax.random.split(key, 4)

    x = jax.random.normal(kx, (N, in_channel, H, W), dtype=jnp.float32)
    # Conv2d(in_channel, out_choices*out_channel, kernel_size=1) params
    # (weight (C_out_total, C_in, 1, 1) squeezed to (C_out_total, C_in)).
    weight = jax.random.normal(kw, (c_out_total, in_channel), dtype=jnp.float32) * 0.5
    bias = jax.random.normal(kb, (c_out_total,), dtype=jnp.float32) * 0.1
    # learn_static=True mask: (1, out_channel, out_height, out_width, out_choices).
    mask = jax.random.normal(
        km, (1, out_channel, out_height, out_width, out_choices),
        dtype=jnp.float32) * 0.1

    out = conv_model_mask_forward(
        x, weight, bias, mask,
        out_channel=out_channel, out_height=out_height,
        out_width=out_width, out_choices=out_choices)
    out = jax.block_until_ready(out)

    ref = reference(x, weight, bias, mask,
                    out_channel=out_channel, out_choices=out_choices)
    assert out.shape == (N, out_channel, out_height, out_width, out_choices)
    assert jnp.allclose(out, ref, atol=1e-5, rtol=1e-5), "mismatch vs reference"

    print("KERNEL_OK")
</pallas_src>

<mosaic_0001>
module attributes {stable_mosaic.version = 11 : i64} {
  func.func @conv_mask_kernel(%arg0: i32, %arg1: i32, %arg2: memref<1x4x256xf32, #tpu.memory_space<vmem>>, %arg3: memref<8x4xf32, #tpu.memory_space<vmem>>, %arg4: memref<8x1xf32, #tpu.memory_space<vmem>>, %arg5: memref<8x256xf32, #tpu.memory_space<vmem>>, %arg6: memref<1x8x256xf32, #tpu.memory_space<vmem>>) attributes {dimension_semantics = [#tpu.dimension_semantics<parallel>, #tpu.dimension_semantics<parallel>], iteration_bounds = array<i64: 2, 1>, scalar_prefetch = 0 : i64, scratch_operands = 0 : i64, tpu.core_type = #tpu.core_type<tc>, window_params = [{transform_indices = @transform_0, window_bounds = array<i64: 1, 4, 256>}, {pipeline_mode = #tpu.pipeline_mode<synchronous>, transform_indices = @transform_1, window_bounds = array<i64: 8, 4>}, {pipeline_mode = #tpu.pipeline_mode<synchronous>, transform_indices = @transform_2, window_bounds = array<i64: 8, 1>}, {transform_indices = @transform_3, window_bounds = array<i64: 8, 256>}, {transform_indices = @transform_4, window_bounds = array<i64: 1, 8, 256>}]} {
    %c0 = arith.constant 0 : index
    %c0_0 = arith.constant 0 : index
    %0 = vector.load %arg3[%c0, %c0_0] : memref<8x4xf32, #tpu.memory_space<vmem>>, vector<8x4xf32>
    %c0_1 = arith.constant 0 : index
    %c0_2 = arith.constant 0 : index
    %c0_3 = arith.constant 0 : index
    %1 = vector.load %arg2[%c0_1, %c0_2, %c0_3] : memref<1x4x256xf32, #tpu.memory_space<vmem>>, vector<1x4x256xf32>
    %2 = vector.shape_cast %1 : vector<1x4x256xf32> to vector<4x256xf32>
    %cst = arith.constant dense<0.000000e+00> : vector<8x256xf32>
    %3 = tpu.matmul %0, %2, %cst {dimension_numbers = #tpu.dot_dimension_numbers<[1], [0], [0], [1], [0, 0, 1, 1], [], []>} : vector<8x4xf32>, vector<4x256xf32>, vector<8x256xf32> -> vector<8x256xf32>
    %c0_4 = arith.constant 0 : index
    %c0_5 = arith.constant 0 : index
    %4 = vector.load %arg4[%c0_4, %c0_5] : memref<8x1xf32, #tpu.memory_space<vmem>>, vector<8x1xf32>
    %5 = vector.broadcast %4 : vector<8x1xf32> to vector<8x256xf32>
    %6 = arith.addf %3, %5 : vector<8x256xf32>
    %c0_6 = arith.constant 0 : index
    %c0_7 = arith.constant 0 : index
    %7 = vector.load %arg5[%c0_6, %c0_7] : memref<8x256xf32, #tpu.memory_space<vmem>>, vector<8x256xf32>
    %8 = arith.addf %6, %7 : vector<8x256xf32>
    %c0_8 = arith.constant 0 : index
    %c0_9 = arith.constant 0 : index
    %c0_10 = arith.constant 0 : index
    %9 = vector.load %arg6[%c0_8, %c0_9, %c0_10] : memref<1x8x256xf32, #tpu.memory_space<vmem>>, vector<1x8x256xf32>
    %10 = vector.shape_cast %9 : vector<1x8x256xf32> to vector<8x256xf32>
    %11 = vector.shape_cast %8 : vector<8x256xf32> to vector<1x8x256xf32>
    tpu.vector_store %arg6[%c0_8, %c0_9, %c0_10], %11 {strides = array<i32>} : memref<1x8x256xf32, #tpu.memory_space<vmem>>, vector<1x8x256xf32>,
    return
  }
  func.func @transform_0(%arg0: i32, %arg1: i32) -> (i32, i32, i32) {
    %c0_i32 = arith.constant 0 : i32
    %c0_i32_0 = arith.constant 0 : i32
    return %arg0, %c0_i32, %arg1 : i32, i32, i32
  }
  func.func @transform_1(%arg0: i32, %arg1: i32) -> (i32, i32) {
    %c0_i32 = arith.constant 0 : i32
    %c0_i32_0 = arith.constant 0 : i32
    %c0_i32_1 = arith.constant 0 : i32
    return %c0_i32, %c0_i32_0 : i32, i32
  }
  func.func @transform_2(%arg0: i32, %arg1: i32) -> (i32, i32) {
    %c0_i32 = arith.constant 0 : i32
    %c0_i32_0 = arith.constant 0 : i32
    %c0_i32_1 = arith.constant 0 : i32
    return %c0_i32, %c0_i32_0 : i32, i32
  }
  func.func @transform_3(%arg0: i32, %arg1: i32) -> (i32, i32) {
    %c0_i32 = arith.constant 0 : i32
    %c0_i32_0 = arith.constant 0 : i32
    return %c0_i32, %arg1 : i32, i32
  }
  func.func @transform_4(%arg0: i32, %arg1: i32) -> (i32, i32, i32) {
    %c0_i32 = arith.constant 0 : i32
    %c0_i32_0 = arith.constant 0 : i32
    return %arg0, %c0_i32, %arg1 : i32, i32, i32
  }
}

</mosaic_0001>

<bundles_post_ra>
// kernel: tpu_custom_call.1
= control target key start
LH: loop header
LB: loop body
LE: loop exit
PB: predicated region body
PF: predicated region fallthrough
CT: control target
= control target key end

     0   :  { %9 = vsyncpa [#allocation3], 0  ;;  %s763_s0 = inlined_call_operand.vmem [shape: f32[2,4,256], index: 0, kind: input, shape index: {}]   ;;  %s764_s1 = inlined_call_operand.vmem [shape: f32[8,4], index: 1, kind: input, shape index: {}]   ;;  %s765_s2 = inlined_call_operand.vmem [shape: f32[8,1], index: 2, kind: input, shape index: {}]   ;;  %s766_s3 = inlined_call_operand.vmem [shape: f32[8,256], index: 3, kind: input, shape index: {}]   ;;  %s767_s4 = inlined_call_operand.hbm [shape: f32[2,8,256], index: 4, kind: output, shape index: {}]  }
   0x1   :  { %11 = vsyncpa [#allocation3 + $0x1], 0  ;;  %s639_s15 = smov 0   ;;  %s641_s16 = smov 0  }
   0x2   :  { %s643_s17 = smov 0   ;;  %s645_s18 = smov 0  }
   0x3   :  { %s647_s19 = smov 0   ;;  %s649_s20 = smov 0  }
   0x4 LB: > { %s453_s21 = sadd.s32 4294967295, %s609_s20   ;;  %s454_s22 = sadd.s32 4294967294, %s609_s20   ;;  %s609_s20 = sphi %s649_s20, %s17_s20   ;;  %s605_s19 = sphi %s647_s19, %s774_s19   ;;  %s601_s18 = sphi %s645_s18, %s773_s18   ;;  %s597_s17 = sphi %s643_s17, %s772_s17   ;;  %s593_s16 = sphi %s641_s16, %s771_s16   ;;  %s589_s15 = sphi %s639_s15, %s770_s15  }
   0x5   : > { %s29_s23 = sadd.s32 1, %s605_s19  ;;  %s134_s24 = sadd.s32 1, %s597_s17 }
   0x6   : > { %p31_p0 = scmp.ge.s32.totalorder %s29_s23, 2  ;;  %p144_p1 = scmp.ne.s32.totalorder %s597_s17, %s593_s16 }
   0x7   : > { %p145_p2 = scmp.eq.s32.totalorder %s453_s21, 1  ;;  %p150_p3 = scmp.ne.s32.totalorder %s593_s16, %s589_s15 }
   0x8   : > { %s776_s23 = smov (%p31_p0, %s29_s23), 0  ;;  %p151_p5 = scmp.eq.s32.totalorder %s454_s22, 1 }
   0x9   : > { %p679_p4 = por %p145_p2, %p144_p1  ;;  %s129_s26 = ssub.s32 %s605_s19, %s776_s23 }
   0xa   : > { %p458_p6 = scmp.ge.s32.totalorder %s609_s20, 1  ;;  %p132_p7 = scmp.eq.s32.totalorder %s129_s26, 0 }
   0xb   : > { %p686_p8 = por %p151_p5, %p150_p3  ;;  %p197_p9 = scmp.lt.s32.totalorder %s609_s20, 3 }
   0xc   : > { %s692_s28 = scalar_select %p132_p7, %s597_s17, %s134_s24  }
   0xd   : > { %p198_p10 = pnand %p458_p6, %p197_p9 }
   0xe   : > { %p233_p11 = scmp.lt.s32.totalorder (!%p198_p10), %s601_s18, 1  ;;  %v611_v0 = vmov (!%p198_p10), 0.0   ;;  %v612_v1 = vmov (!%p198_p10), 0   ;;  %v251_v2 = vld [vmem:[%s765_s2] sm:$0xff] (!%p198_p10)  ;;  %vm263_vm0 = vcmask (!%p198_p10), 1043456   ;;  %vm259_vm1 = vcmask (!%p198_p10), 31744  }
   0xf   : > { %201 = sbr.rel (%p198_p10) target bundleno = 262 (0x106), region = 36  ;;  %332 = vmatprep.mubr.f32.mxu0 (!%p198_p10), %v611_v0  ;;  %529 = vset.pattern.permute.xlu0 (!%p198_p10), %v612_v1  ;;  %v249_v5 = vld [vmem:[%s764_s1] sm:$0xff] (!%p198_p10)  ;;  %s229_s12 = sand.u32 (!%p198_p10), 1, %s593_s16   ;;  %v340_v11 = vld [vmem:[%s766_s3 + $0x8] sm:$0xff] (!%p198_p10) }
  0x10   : > { %254 = vperm.xlu0 (!%p198_p10), %529, %v251_v2   ;;  %s459_s13 = sshll.u32 (!%p198_p10), %s229_s12, 4  ;;  %v339_v8 = vld [vmem:[%s766_s3] sm:$0xff] (!%p198_p10)  ;;  %s471_s26 = sshll.u32 (!%p198_p10), %s601_s18, 8 }
  0x11   : > { %s231_s29 = scalar_lea.vmem (!%p198_p10), [#allocation2], %s459_s13  ;;  %s716_s7 = scalar_lea.hbm (!%p198_p10), %s767_s4, %s471_s26 }
  0x12   : > { %s362_s30 = sshll.u32 (!%p198_p10), %s231_s29, 4  ;;  %s346_s8 = scalar_lea.sflag (!%p198_p10), [#allocation3], %s229_s12  ;;  %s718_s30 = int_to_ptr.vmem [resolvable:$true] %s362_s30 }
  0x16   : > { %s234_s5 = scalar_select %p233_p11, %s601_s18, 1 }
  0x17   : > { %s613_s18 = smov [#allocation2]  }
  0x18   : > { %s470_s6 = sshll.u32 %s234_s5, 3  ;;  %s535_s10 = sshll.u32 %s613_s18, 4  ;;  %s536_s10 = int_to_ptr.vmem [resolvable:$false] %s535_s10 }
  0x19   : > { %s240_s9 = scalar_lea.vmem %s763_s0, %s470_s6  ;;  %s537_s11 = scalar_lea.vmem %s536_s10, 512 }
  0x1a   : > { %v250_v3 = vld [vmem:[%s240_s9] sm:$0xff]  ;;  %s531_s9 = scalar_lea.vmem %s718_s30, 256  ;;  %p538_p1 = scmp.lt.s32.totalorder %s718_s30, %s536_s10 }
  0x1b   : > { %v258_v4 = vcombine.high %v250_v3, %v250_v3  ;;  %p532_p12 = scmp.ne.s32.totalorder %s718_s30, %s531_s9  ;;  %p539_p2 = scmp.lt.s32.totalorder %s537_s11, %s531_s9 }
  0x1d   : > { %462 = vmatprep.subr.msk.mxu0 %vm263_vm0, %v258_v4  ;;  %p533_p13 = pnand %p532_p12, %p679_p4  ;;  %p540_p3 = por %p539_p2, %p538_p1 }
  0x1e   : > { %463 = vmatpush1.msk.msra.mxu0 %vm263_vm0, %v250_v3 }
  0x1f   : > { %464 = vmatmul.mubr.msk.f32.vlgmr.msra.gmra.mrb[0].mxu0 %vm259_vm1, %v249_v5  ;;  %p534_p0 = pneg %p533_p13 }
  0x21   : > { %p541_p5 = pnand %p540_p3, %p534_p0 }
  0x8f   : > { %v255_v6 = vpop.permute.xlu0 %254 }
  0xf2   : > { %v334_v7 = vpop.f32.mrb[0].mxu0 }
  0xf3   : > { %v335_v9 = vadd.f32 %v334_v7, %v255_v6  ;;  %v336_v10 = vpop.f32.mrb[1].mxu0 }
  0xf4   : > { %v337_v12 = vadd.f32 %v336_v10, %v255_v6 }
  0xf5   : > { %v341_v13 = vadd.f32 %v339_v8, %v335_v9 }
  0xf6   : > { %v342_v14 = vadd.f32 %v340_v11, %v337_v12 }
  0xf7   : > { %343 = vst [vmem:[%s231_s29] sm:$0xff] %v341_v13 }
  0xf8   : > { %344 = vst [vmem:[%s231_s29 + $0x8] sm:$0xff] %v342_v14 }
  0xf9   : > { %544 = shalt.err (!%p541_p5)
}
  0xfa   : > { %s545_s12 = scalar_lea.hbm %s716_s7, 256  ;;  %s549_s21 = scalar_lea.hbm %s767_s4, 512 }
  0xfb   : > { %p546_p6 = scmp.ne.s32.totalorder %s716_s7, %s545_s12  ;;  %p550_p10 = scmp.lt.u32.totalorder %s716_s7, %s767_s4 }
  0xfc   : > { %p551_p11 = scmp.lt.u32.totalorder %s549_s21, %s545_s12  ;;  %p553_p13 = scmp.lt.u32.totalorder %s545_s12, %s716_s7 }
  0xfd   : > { %p547_p7 = pnand %p546_p6, %p679_p4 }
  0xfe   : > { %p552_p12 = por %p551_p11, %p550_p10 }
  0xff   : > { %p548_p9 = pneg %p547_p7 }
 0x100   : > { %p554_p0 = por %p553_p13, %p552_p12 }
 0x102   : > { %p555_p1 = pnand %p554_p0, %p548_p9 }
 0x104   : > { %558 = shalt.err (!%p555_p1)
}
 0x105   : > { %472 = dma.vmem_to_hbm [thread:$0]  (%p679_p4), %s718_s30, 256, %s716_s7, %s346_s8  }
 0x106 PF: > { %p478_p2 = scmp.ge.s32.totalorder %s609_s20, 2  ;;  %s374_s26 = sand.u32 1, %s589_s15  }
 0x107   : > { %s375_s29 = scalar_lea.sflag [#allocation3], %s374_s26 }
 0x108   : > { %p475_p3 = pnand %p478_p2, %p686_p8 }
 0x10a   : > { %584 = dma.done.wait (!%p475_p3), %s375_s29, 256  }
 0x10b   : > { %586 = vsyncadd (!%p475_p3), %s375_s29, 4294967040  ;;  %s17_s20 = sadd.s32 1, %s609_s20   ;;  %s770_s15 = smov %s593_s16 }
 0x10c   : > { %p14_p5 = scmp.ge.s32.totalorder %s17_s20, 4   ;;  %s771_s16 = smov %s597_s17 }
 0x10d   : > { %s772_s17 = smov %s692_s28  ;;  %s773_s18 = smov %s605_s19 }
 0x10e   : > { %s774_s19 = smov %s776_s23  ;;  %16 = sbr.rel (!%p14_p5) target bundleno = 4 (0x4), region = 74 }
 0x115   :  { %380 = vsyncpa [#allocation3], 1 }
 0x116   :  { %382 = vsyncpa [#allocation3 + $0x1], 1 }

</bundles_post_ra>
